<compile_context>
chip_gen: v7x
topology: tpu7x:2x2x1
jax: 0.10.0
libtpu: 0.0.40
codegen_flags: <defaults>
</compile_context>

<pallas_src>
import functools
import math

import jax
import jax.numpy as jnp
from jax import lax
from jax.experimental import pallas as pl
from jax.experimental.pallas import tpu as pltpu


def _round_up(x, m):
    return ((x + m - 1) // m) * m


def _ceil_div(a, b):
    return -(-a // b)


# ----------------------------------------------------------------------------
# Kernel A: conv (one fused matmul over the 3 window positions) + bias
#           + MaxPool1d(3, 3) + BatchNorm batch statistics
# ----------------------------------------------------------------------------
def _conv_pool_stats_kernel(xw_ref, w_ref, b_ref, pooled_ref, sum_ref, sumsq_ref):
    # xw_ref: (3*tile_g, Kp) bf16 im2col rows; the three conv positions of the
    #         tile's pool groups are stacked as 3 consecutive tile_g-row slabs,
    #         each slab ordered time-major (t, b).
    # w_ref:  (Kp, C) bf16 conv weight.   b_ref: (1, C) f32 conv bias.
    # pooled_ref: (tile_g, C) bf16 pre-BN max-pooled conv output.
    # sum_ref / sumsq_ref: (1, C) f32 resident accumulators (this core's stats).
    @pl.when(pl.program_id(1) == 0)
    def _init():
        sum_ref[...] = jnp.zeros_like(sum_ref)
        sumsq_ref[...] = jnp.zeros_like(sumsq_ref)

    tg = pooled_ref.shape[0]
    # One MXU matmul for all 3 window positions (M = 3*tile_g), one bias add.
    y = jnp.dot(xw_ref[...], w_ref[...],
                preferred_element_type=jnp.float32) + b_ref[...]

    # BatchNorm statistics over ALL B*L pre-pool conv outputs (f32).
    sum_ref[...] += jnp.sum(y, axis=0, keepdims=True)
    sumsq_ref[...] += jnp.sum(y * y, axis=0, keepdims=True)

    # MaxPool1d(3, 3): commutes with the monotone (gamma = 1 > 0) BN + ReLU
    # applied downstream, so pool the raw (biased) conv output; store bf16.
    pooled = jnp.maximum(jnp.maximum(y[:tg], y[tg:2 * tg]), y[2 * tg:3 * tg])
    pooled_ref[...] = pooled.astype(pooled_ref.dtype)


def conv_pool_stats(xw, w_t, bias, *, tile_g, n_split, n_per):
    kp = xw.shape[1]
    c = w_t.shape[1]
    g_pad = n_split * n_per * tile_g
    return pl.pallas_call(
        _conv_pool_stats_kernel,
        out_shape=(
            jax.ShapeDtypeStruct((g_pad, c), jnp.bfloat16),    # pooled (pre-BN)
            jax.ShapeDtypeStruct((n_split, c), jnp.float32),   # per-core sum
            jax.ShapeDtypeStruct((n_split, c), jnp.float32),   # per-core sumsq
        ),
        grid=(n_split, n_per),
        in_specs=[
            pl.BlockSpec((3 * tile_g, kp), lambda p, i: (p * n_per + i, 0)),
            pl.BlockSpec((kp, c), lambda p, i: (0, 0)),
            pl.BlockSpec((1, c), lambda p, i: (0, 0)),
        ],
        out_specs=(
            pl.BlockSpec((tile_g, c), lambda p, i: (p * n_per + i, 0)),
            pl.BlockSpec((1, c), lambda p, i: (p, 0)),
            pl.BlockSpec((1, c), lambda p, i: (p, 0)),
        ),
        compiler_params=pltpu.CompilerParams(
            # Row-tile axis is sequential (resident stats accumulators); the
            # leading split axis is parallel so v7x can use both TensorCores.
            dimension_semantics=("parallel", "arbitrary")),
    )(xw, w_t, bias)


# ----------------------------------------------------------------------------
# Kernel B: all 4 LSTM layers fused (batched input projection per time chunk,
#           serial recurrence per step) + final Linear(128->1) + Sigmoid
# ----------------------------------------------------------------------------
def _lstm4_fc_kernel(x_ref, wih_ref, whh_ref, b_ref, scale_ref, shift_ref,
                     fcw_ref, fcb_ref, out_ref,
                     h_sc, c_sc, act_sc, gx_sc,
                     *, hidden, batch, batch_pad, t_tile, n_layers, seq_len,
                     needs_mask, unroll):
    tc = pl.program_id(0)
    H = hidden
    bp = batch_pad

    @pl.when(tc == 0)
    def _init():
        h_sc[...] = jnp.zeros_like(h_sc)
        c_sc[...] = jnp.zeros_like(c_sc)

    # Layer-0 input: BatchNorm (batch-stats scale/shift, gamma=1, beta=0) and
    # ReLU fused into the chunk load.
    x = x_ref[...].astype(jnp.float32)                       # (t_tile*bp, H)
    act_in = jnp.maximum(x * scale_ref[...] + shift_ref[...], 0.0)

    for l in range(n_layers):
        wih = wih_ref[l]                                     # (H, 4H) bf16
        whh = whh_ref[l]                                     # (H, 4H) bf16
        bias = b_ref[l]                                      # (1, 4H) f32
        inp = act_in if l == 0 else act_sc[...]              # (t_tile*bp, H)
        last = l == n_layers - 1

        # Batched input projection for the whole chunk (M = t_tile*bp): takes
        # the x @ W_ih^T matmul off the serial recurrence critical path.
        gx_sc[...] = jnp.dot(inp.astype(jnp.bfloat16), wih,
                             preferred_element_type=jnp.float32) + bias

        def step(j, carry):
            h, c = carry
            idx = pl.multiple_of(j * bp, bp)                 # 8-aligned slice
            gh = jnp.dot(h.astype(jnp.bfloat16), whh,
                         preferred_element_type=jnp.float32)
            g = gx_sc[pl.ds(idx, bp), :] + gh                # (bp, 4H)
            # Gate packing is (i, f, o, g): one sigmoid over a contiguous
            # (bp, 3H) slab + one tanh.
            sig = jax.nn.sigmoid(g[:, :3 * H])
            i_g = sig[:, 0 * H:1 * H]
            f_g = sig[:, 1 * H:2 * H]
            o_g = sig[:, 2 * H:3 * H]
            g_g = jnp.tanh(g[:, 3 * H:4 * H])
            c_new = f_g * c + i_g * g_g
            h_new = o_g * jnp.tanh(c_new)
            if needs_mask:
                valid = tc * t_tile + j < seq_len            # padded time step?
                h_new = jnp.where(valid, h_new, h)
                c_new = jnp.where(valid, c_new, c)
            if not last:
                act_sc[pl.ds(idx, bp), :] = h_new            # next layer input
            return h_new, c_new

        h_f, c_f = lax.fori_loop(0, t_tile, step, (h_sc[l], c_sc[l]),
                                 unroll=unroll)
        h_sc[l] = h_f
        c_sc[l] = c_f

    # Final Linear(128 -> 1) + Sigmoid folded into the last grid step
    # (lane-reduction instead of an N=1 matmul).
    @pl.when(tc == pl.num_programs(0) - 1)
    def _fc():
        h_last = h_sc[n_layers - 1]                          # (bp, H) f32
        logit = jnp.sum(h_last * fcw_ref[...], axis=-1, keepdims=True)
        out_ref[...] = jax.nn.sigmoid(logit[:batch] + fcb_ref[...])


def lstm4_fc(x, wih_all, whh_all, bias_all, bn_scale, bn_shift, fc_w, fc_b, *,
             batch, batch_pad, seq_len, t_tile, n_chunks):
    n_layers, H, G4 = wih_all.shape
    rows = t_tile * batch_pad
    kernel = functools.partial(
        _lstm4_fc_kernel,
        hidden=H, batch=batch, batch_pad=batch_pad, t_tile=t_tile,
        n_layers=n_layers, seq_len=seq_len,
        needs_mask=(n_chunks * t_tile != seq_len),
        unroll=min(8, t_tile))
    return pl.pallas_call(
        kernel,
        out_shape=jax.ShapeDtypeStruct((batch, 1), jnp.float32),
        grid=(n_chunks,),
        in_specs=[
            pl.BlockSpec((rows, H), lambda t: (t, 0)),
            pl.BlockSpec((n_layers, H, G4), lambda t: (0, 0, 0)),
            pl.BlockSpec((n_layers, H, G4), lambda t: (0, 0, 0)),
            pl.BlockSpec((n_layers, 1, G4), lambda t: (0, 0, 0)),
            pl.BlockSpec((1, H), lambda t: (0, 0)),
            pl.BlockSpec((1, H), lambda t: (0, 0)),
            pl.BlockSpec((1, H), lambda t: (0, 0)),
            pl.BlockSpec((1, 1), lambda t: (0, 0)),
        ],
        out_specs=pl.BlockSpec((batch, 1), lambda t: (0, 0)),
        scratch_shapes=[
            pltpu.VMEM((n_layers, batch_pad, H), jnp.float32),   # h state
            pltpu.VMEM((n_layers, batch_pad, H), jnp.float32),   # c state
            pltpu.VMEM((rows, H), jnp.float32),                  # inter-layer acts
            pltpu.VMEM((rows, 4 * H), jnp.float32),              # batched gx
        ],
        compiler_params=pltpu.CompilerParams(
            dimension_semantics=("arbitrary",)),                 # serial recurrence
    )(x, wih_all, whh_all, bias_all, bn_scale, bn_shift, fc_w, fc_b)


# ----------------------------------------------------------------------------
# Model glue
# ----------------------------------------------------------------------------
def _conv_tiling(g, cap=1024):
    # Two row tiles (one per TensorCore) when there is enough work; tiles are
    # multiples of 16 rows (bf16 sublane packing) and capped so the VMEM
    # footprint stays small even on v7x's 64 MiB.
    n_split = 2 if g >= 64 else 1
    n_tiles = n_split * max(1, _ceil_div(g, cap * n_split))
    tile_g = _round_up(_ceil_div(g, n_tiles), 16)
    n_per = n_tiles // n_split
    g_pad = tile_g * n_tiles
    return tile_g, n_split, n_per, n_tiles, g_pad


def _conv_window_inputs(x, tile_g, n_tiles, kp=128):
    # im2col rows grouped by max-pool window, time-major (t, b) group order,
    # arranged so one contiguous (3*tile_g, kp) block per grid step holds the
    # three conv positions of its tile_g pool groups.
    B, C, L = x.shape
    T = L // 3
    K = 3
    CK = C * K
    xp = jnp.pad(x, ((0, 0), (0, 0), (1, 1)))
    # cols[b, c, t, k] = xp[b, c, t + k]  (window element k at conv position t)
    cols = jnp.stack([xp[:, :, k:k + L] for k in range(K)], axis=-1)
    cols = jnp.transpose(cols, (0, 2, 1, 3)).reshape(B, L, CK)   # feat = (c, k)
    cols = cols.reshape(B, T, K, CK)               # split L -> (pool group, pos)
    cols = jnp.transpose(cols, (2, 1, 0, 3)).reshape(K, T * B, CK)
    g_pad = tile_g * n_tiles
    cols = jnp.pad(cols, ((0, 0), (0, g_pad - T * B), (0, kp - CK)))
    cols = cols.reshape(K, n_tiles, tile_g, kp)
    cols = jnp.transpose(cols, (1, 0, 2, 3)).reshape(n_tiles * K * tile_g, kp)
    return cols.astype(jnp.bfloat16)


def custom_mel14_forward(x, params):
    B, C_in, L = x.shape
    assert C_in == 40 and L % 3 == 0
    H = 128
    T = L // 3
    G = T * B

    # --- Kernel A: Conv1d(40->128,k3,s1,p1) + bias + MaxPool1d(3,3) + BN stats
    tile_g, n_split, n_per, n_tiles, g_pad = _conv_tiling(G)
    xw = _conv_window_inputs(x, tile_g, n_tiles)
    pooled, s_parts, ss_parts = conv_pool_stats(
        xw, params["conv_w_t"], params["conv_b"],
        tile_g=tile_g, n_split=n_split, n_per=n_per)

    # BatchNorm1d training-mode batch statistics over all B*L conv outputs
    # (gamma=1, beta=0 per init_bn).  Padded group rows contribute exactly
    # 3*(g_pad - G) rows of pure bias -> subtract their closed-form contribution.
    bias = params["conv_b"]
    pad_rows = 3.0 * (g_pad - G)
    s = jnp.sum(s_parts, axis=0, keepdims=True) - pad_rows * bias
    ss = jnp.sum(ss_parts, axis=0, keepdims=True) - pad_rows * bias * bias
    n = float(B * L)
    mean = s / n
    var = jnp.maximum(ss / n - mean * mean, 0.0)
    rstd = lax.rsqrt(var + 1e-5)
    bn_scale = rstd                       # gamma = 1
    bn_shift = -mean * rstd               # beta  = 0
    # Dropout(p=0.15) is identity at inference time (no stochastic mask).

    # --- Kernel B: fused 4-layer LSTM + last-step Linear(128->1) + Sigmoid
    t_tile = min(64, T)
    n_chunks = _ceil_div(T, t_tile)
    T_pad = n_chunks * t_tile
    B_pad = _round_up(B, 8)               # sublane-aligned per-step slices
    h_in = pooled[:G].reshape(T, B, H)
    h_in = jnp.pad(h_in, ((0, T_pad - T), (0, B_pad - B), (0, 0)))
    h_in = h_in.reshape(T_pad * B_pad, H)

    return lstm4_fc(
        h_in, params["lstm_wih"], params["lstm_whh"], params["lstm_bias"],
        bn_scale, bn_shift, params["fc_w"], params["fc_b"],
        batch=B, batch_pad=B_pad, seq_len=T, t_tile=t_tile, n_chunks=n_chunks)


def init_params(key):
    H = 128
    ks = jax.random.split(key, 24)
    params = {}

    # Conv1d(40->128, k=3): He-uniform per init_layer (n = 40*3), bias 0.
    n = 40 * 3
    scale = math.sqrt(2.0 / n) * math.sqrt(3.0)
    conv_w = jax.random.uniform(ks[0], (128, 40, 3), jnp.float32, -scale, scale)
    w_t = conv_w.reshape(128, n).T                   # (120, 128), feature=(c,k)
    w_t = jnp.pad(w_t, ((0, 128 - n), (0, 0)))       # pad K: 120 -> 128 (zeros)
    params["conv_w_t"] = w_t.astype(jnp.bfloat16)
    params["conv_b"] = jnp.zeros((1, 128), jnp.float32)

    # LSTM (4 layers): PyTorch default U(-1/sqrt(H), 1/sqrt(H)).  PyTorch packs
    # gates as (i, f, g, o); reorder to (i, f, o, g) so the three sigmoid gates
    # form one contiguous slab inside the kernel.
    def reorder(w):                                  # rows (4H, ...) in i,f,g,o
        return jnp.concatenate([w[:2 * H], w[3 * H:], w[2 * H:3 * H]], axis=0)

    k_lstm = 1.0 / math.sqrt(H)
    wih_l, whh_l, b_l = [], [], []
    ki = 1
    for _ in range(4):
        wih = jax.random.uniform(ks[ki], (4 * H, H), jnp.float32, -k_lstm, k_lstm); ki += 1
        whh = jax.random.uniform(ks[ki], (4 * H, H), jnp.float32, -k_lstm, k_lstm); ki += 1
        bih = jax.random.uniform(ks[ki], (4 * H,), jnp.float32, -k_lstm, k_lstm); ki += 1
        bhh = jax.random.uniform(ks[ki], (4 * H,), jnp.float32, -k_lstm, k_lstm); ki += 1
        wih_l.append(reorder(wih).T.astype(jnp.bfloat16))        # (128, 512)
        whh_l.append(reorder(whh).T.astype(jnp.bfloat16))        # (128, 512)
        b_l.append(reorder(bih + bhh).reshape(1, 4 * H))         # (1, 512) f32
    params["lstm_wih"] = jnp.stack(wih_l)            # (4, 128, 512) bf16
    params["lstm_whh"] = jnp.stack(whh_l)            # (4, 128, 512) bf16
    params["lstm_bias"] = jnp.stack(b_l)             # (4, 1, 512) f32

    # Final Linear(128 -> 1): He-uniform (n=128), bias 0 (sigmoid applied after).
    n = 128
    scale = math.sqrt(2.0 / n) * math.sqrt(3.0)
    params["fc_w"] = jax.random.uniform(ks[ki], (1, 128), jnp.float32,
                                        -scale, scale)           # row vector
    params["fc_b"] = jnp.zeros((1, 1), jnp.float32)
    return params


if __name__ == "__main__":
    key = jax.random.PRNGKey(0)
    k_param, k_x = jax.random.split(key)
    params = init_params(k_param)

    # batch=2, freq=40 (required by the conv), width=24 -> pooled length T=8.
    x = jax.random.normal(k_x, (2, 40, 24), jnp.float32)

    out = custom_mel14_forward(x, params)
    out = jax.block_until_ready(out)
    assert out.shape == (2, 1), out.shape
    print("KERNEL_OK")
</pallas_src>

<mosaic_0001>
module attributes {stable_mosaic.version = 11 : i64} {
  func.func @_conv_pool_stats_kernel(%arg0: i32, %arg1: i32, %arg2: memref<48x128xbf16, #tpu.memory_space<vmem>>, %arg3: memref<128x128xbf16, #tpu.memory_space<vmem>>, %arg4: memref<1x128xf32, #tpu.memory_space<vmem>>, %arg5: memref<16x128xbf16, #tpu.memory_space<vmem>>, %arg6: memref<1x128xf32, #tpu.memory_space<vmem>>, %arg7: memref<1x128xf32, #tpu.memory_space<vmem>>) attributes {dimension_semantics = [#tpu.dimension_semantics<parallel>, #tpu.dimension_semantics<arbitrary>], iteration_bounds = array<i64: 1, 1>, scalar_prefetch = 0 : i64, scratch_operands = 0 : i64, tpu.core_type = #tpu.core_type<tc>, window_params = [{transform_indices = @transform_0, window_bounds = array<i64: 48, 128>}, {pipeline_mode = #tpu.pipeline_mode<synchronous>, transform_indices = @transform_1, window_bounds = array<i64: 128, 128>}, {pipeline_mode = #tpu.pipeline_mode<synchronous>, transform_indices = @transform_2, window_bounds = array<i64: 1, 128>}, {transform_indices = @transform_3, window_bounds = array<i64: 16, 128>}, {transform_indices = @transform_4, window_bounds = array<i64: 1, 128>}, {transform_indices = @transform_5, window_bounds = array<i64: 1, 128>}]} {
    %c0_i32 = arith.constant 0 : i32
    %0 = arith.cmpi eq, %arg1, %c0_i32 : i32
    %1 = arith.extui %0 : i1 to i32
    %c0_i32_0 = arith.constant 0 : i32
    %2 = arith.cmpi ne, %1, %c0_i32_0 : i32
    scf.if %2 {
      %cst_18 = arith.constant 0.000000e+00 : f32
      %27 = vector.broadcast %cst_18 : f32 to vector<1x128xf32>
      %c0_19 = arith.constant 0 : index
      %c0_20 = arith.constant 0 : index
      %28 = vector.load %arg6[%c0_19, %c0_20] : memref<1x128xf32, #tpu.memory_space<vmem>>, vector<1x128xf32>
      tpu.vector_store %arg6[%c0_19, %c0_20], %27 {strides = array<i32>} : memref<1x128xf32, #tpu.memory_space<vmem>>, vector<1x128xf32>,
      %cst_21 = arith.constant 0.000000e+00 : f32
      %29 = vector.broadcast %cst_21 : f32 to vector<1x128xf32>
      %c0_22 = arith.constant 0 : index
      %c0_23 = arith.constant 0 : index
      %30 = vector.load %arg7[%c0_22, %c0_23] : memref<1x128xf32, #tpu.memory_space<vmem>>, vector<1x128xf32>
      tpu.vector_store %arg7[%c0_22, %c0_23], %29 {strides = array<i32>} : memref<1x128xf32, #tpu.memory_space<vmem>>, vector<1x128xf32>,
    } else {
    }
    %c0 = arith.constant 0 : index
    %c0_1 = arith.constant 0 : index
    %3 = vector.load %arg2[%c0, %c0_1] : memref<48x128xbf16, #tpu.memory_space<vmem>>, vector<48x128xbf16>
    %c0_2 = arith.constant 0 : index
    %c0_3 = arith.constant 0 : index
    %4 = vector.load %arg3[%c0_2, %c0_3] : memref<128x128xbf16, #tpu.memory_space<vmem>>, vector<128x128xbf16>
    %cst = arith.constant dense<0.000000e+00> : vector<48x128xf32>
    %5 = tpu.matmul %3, %4, %cst {dimension_numbers = #tpu.dot_dimension_numbers<[1], [0], [0], [1], [0, 0, 1, 1], [], []>} : vector<48x128xbf16>, vector<128x128xbf16>, vector<48x128xf32> -> vector<48x128xf32>
    %c0_4 = arith.constant 0 : index
    %c0_5 = arith.constant 0 : index
    %6 = vector.load %arg4[%c0_4, %c0_5] : memref<1x128xf32, #tpu.memory_space<vmem>>, vector<1x128xf32>
    %7 = vector.broadcast %6 : vector<1x128xf32> to vector<48x128xf32>
    %8 = arith.addf %5, %7 : vector<48x128xf32>
    %c0_6 = arith.constant 0 : index
    %c0_7 = arith.constant 0 : index
    %9 = vector.load %arg6[%c0_6, %c0_7] : memref<1x128xf32, #tpu.memory_space<vmem>>, vector<1x128xf32>
    %cst_8 = arith.constant dense<0.000000e+00> : vector<128xf32>
    %10 = vector.multi_reduction <add>, %8, %cst_8 [0] : vector<48x128xf32> to vector<128xf32>
    %11 = vector.shape_cast %10 : vector<128xf32> to vector<1x128xf32>
    %12 = arith.addf %9, %11 : vector<1x128xf32>
    %c0_9 = arith.constant 0 : index
    %c0_10 = arith.constant 0 : index
    %13 = vector.load %arg6[%c0_9, %c0_10] : memref<1x128xf32, #tpu.memory_space<vmem>>, vector<1x128xf32>
    tpu.vector_store %arg6[%c0_9, %c0_10], %12 {strides = array<i32>} : memref<1x128xf32, #tpu.memory_space<vmem>>, vector<1x128xf32>,
    %c0_11 = arith.constant 0 : index
    %c0_12 = arith.constant 0 : index
    %14 = vector.load %arg7[%c0_11, %c0_12] : memref<1x128xf32, #tpu.memory_space<vmem>>, vector<1x128xf32>
    %15 = arith.mulf %8, %8 : vector<48x128xf32>
    %cst_13 = arith.constant dense<0.000000e+00> : vector<128xf32>
    %16 = vector.multi_reduction <add>, %15, %cst_13 [0] : vector<48x128xf32> to vector<128xf32>
    %17 = vector.shape_cast %16 : vector<128xf32> to vector<1x128xf32>
    %18 = arith.addf %14, %17 : vector<1x128xf32>
    %c0_14 = arith.constant 0 : index
    %c0_15 = arith.constant 0 : index
    %19 = vector.load %arg7[%c0_14, %c0_15] : memref<1x128xf32, #tpu.memory_space<vmem>>, vector<1x128xf32>
    tpu.vector_store %arg7[%c0_14, %c0_15], %18 {strides = array<i32>} : memref<1x128xf32, #tpu.memory_space<vmem>>, vector<1x128xf32>,
    %20 = vector.extract_strided_slice %8 {offsets = [0, 0], sizes = [16, 128], strides = [1, 1]} : vector<48x128xf32> to vector<16x128xf32>
    %21 = vector.extract_strided_slice %8 {offsets = [16, 0], sizes = [16, 128], strides = [1, 1]} : vector<48x128xf32> to vector<16x128xf32>
    %22 = arith.maximumf %20, %21 : vector<16x128xf32>
    %23 = vector.extract_strided_slice %8 {offsets = [32, 0], sizes = [16, 128], strides = [1, 1]} : vector<48x128xf32> to vector<16x128xf32>
    %24 = arith.maximumf %22, %23 : vector<16x128xf32>
    %25 = arith.truncf %24 : vector<16x128xf32> to vector<16x128xbf16>
    %c0_16 = arith.constant 0 : index
    %c0_17 = arith.constant 0 : index
    %26 = vector.load %arg5[%c0_16, %c0_17] : memref<16x128xbf16, #tpu.memory_space<vmem>>, vector<16x128xbf16>
    tpu.vector_store %arg5[%c0_16, %c0_17], %25 {strides = array<i32>} : memref<16x128xbf16, #tpu.memory_space<vmem>>, vector<16x128xbf16>,
    return
  }
  func.func @transform_0(%arg0: i32, %arg1: i32) -> (i32, i32) {
    %c1_i32 = arith.constant 1 : i32
    %0 = arith.muli %arg0, %c1_i32 : i32
    %1 = arith.addi %0, %arg1 : i32
    %c0_i32 = arith.constant 0 : i32
    %c0_i32_0 = arith.constant 0 : i32
    return %1, %c0_i32 : i32, i32
  }
  func.func @transform_1(%arg0: i32, %arg1: i32) -> (i32, i32) {
    %c0_i32 = arith.constant 0 : i32
    %c0_i32_0 = arith.constant 0 : i32
    %c0_i32_1 = arith.constant 0 : i32
    return %c0_i32, %c0_i32_0 : i32, i32
  }
  func.func @transform_2(%arg0: i32, %arg1: i32) -> (i32, i32) {
    %c0_i32 = arith.constant 0 : i32
    %c0_i32_0 = arith.constant 0 : i32
    %c0_i32_1 = arith.constant 0 : i32
    return %c0_i32, %c0_i32_0 : i32, i32
  }
  func.func @transform_3(%arg0: i32, %arg1: i32) -> (i32, i32) {
    %c1_i32 = arith.constant 1 : i32
    %0 = arith.muli %arg0, %c1_i32 : i32
    %1 = arith.addi %0, %arg1 : i32
    %c0_i32 = arith.constant 0 : i32
    %c0_i32_0 = arith.constant 0 : i32
    return %1, %c0_i32 : i32, i32
  }
  func.func @transform_4(%arg0: i32, %arg1: i32) -> (i32, i32) {
    %c0_i32 = arith.constant 0 : i32
    %c0_i32_0 = arith.constant 0 : i32
    return %arg0, %c0_i32 : i32, i32
  }
  func.func @transform_5(%arg0: i32, %arg1: i32) -> (i32, i32) {
    %c0_i32 = arith.constant 0 : i32
    %c0_i32_0 = arith.constant 0 : i32
    return %arg0, %c0_i32 : i32, i32
  }
}

</mosaic_0001>

<bundles_post_ra>
// kernel: tpu_custom_call.1
= control target key start
LH: loop header
LB: loop body
LE: loop exit
PB: predicated region body
PF: predicated region fallthrough
CT: control target
= control target key end

     0   :  { %11 = vsyncpa [#allocation3], 0  ;;  %s647_s0 = inlined_call_operand.hbm [shape: bf16[48,128], index: 0, kind: input, shape index: {}]   ;;  %s648_s1 = inlined_call_operand.hbm [shape: bf16[128,128], index: 1, kind: input, shape index: {}]   ;;  %s649_s2 = inlined_call_operand.vmem [shape: f32[1,128], index: 2, kind: input, shape index: {}]   ;;  %s650_s3 = inlined_call_operand.hbm [shape: bf16[16,128], index: 3, kind: output, shape index: {0}]   ;;  %s651_s4 = inlined_call_operand.hbm [shape: f32[1,128], index: 4, kind: output, shape index: {1}]   ;;  %s652_s5 = inlined_call_operand.hbm [shape: f32[1,128], index: 5, kind: output, shape index: {2}]  }
   0x1   :  { %12 = vsyncpa [#allocation6], 0 }
   0x2   :  { %13 = vsyncpa [#allocation4], 0 }
   0x3   :  { %14 = vsyncpa [#allocation9], 0  ;;  %s525_s18 = smov [#allocation2]   ;;  %s407_s22 = scalar_lea.hbm %s647_s0, 384 }
   0x4   :  { %s24_s19 = sshll.u32 %s525_s18, 4  ;;  %p408_p0 = scmp.ne.s32.totalorder %s647_s0, %s407_s22  ;;  %s25_s19 = int_to_ptr.vmem [resolvable:$true] %s24_s19 }
   0x5   :  { %p411_p1 = scmp.lt.u32.totalorder %s407_s22, %s647_s0 }
   0x7   :  { %p413_p2 = pnand %p411_p1, %p408_p0 }
   0x9   :  { %416 = shalt.err (!%p413_p2)
}
   0xa   :  { %s417_s27 = scalar_lea.vmem %s25_s19, 384  ;;  %p422_p4 = scmp.lt.s32.totalorder %s25_s19, %s25_s19 }
   0xb   :  { %p418_p3 = scmp.ne.s32.totalorder %s25_s19, %s417_s27  ;;  %p423_p5 = scmp.lt.s32.totalorder %s417_s27, %s417_s27 }
   0xd   :  { %p424_p6 = por %p423_p5, %p422_p4 }
   0xf   :  { %p425_p7 = pnand %p424_p6, %p418_p3 }
  0x11   :  { %428 = shalt.err (!%p425_p7)
}
  0x12   :  { %s526_s28 = smov 64   ;;  %s527_s29 = smov 4  }
  0x13   :  { %30 = dma.hbm_to_vmem [thread:$0]  %s647_s0, 384, %s25_s19, [#allocation3], %s526_s28, %s526_s28, %s527_s29  }
  0x14   :  { %s528_s7 = smov [#allocation5]   ;;  %s429_s11 = scalar_lea.hbm %s648_s1, 1024 }
  0x15   :  { %s36_s8 = sshll.u32 %s528_s7, 4  ;;  %p430_p8 = scmp.ne.s32.totalorder %s648_s1, %s429_s11  ;;  %s37_s8 = int_to_ptr.vmem [resolvable:$true] %s36_s8 }
  0x16   :  { %p433_p9 = scmp.lt.u32.totalorder %s429_s11, %s648_s1 }
  0x18   :  { %p435_p10 = pnand %p433_p9, %p430_p8 }
  0x1a   :  { %438 = shalt.err (!%p435_p10)
}
  0x1b   :  { %s439_s16 = scalar_lea.vmem %s37_s8, 1024  ;;  %p444_p12 = scmp.lt.s32.totalorder %s37_s8, %s37_s8 }
  0x1c   :  { %p440_p11 = scmp.ne.s32.totalorder %s37_s8, %s439_s16  ;;  %p445_p13 = scmp.lt.s32.totalorder %s439_s16, %s439_s16 }
  0x1e   :  { %p446_p0 = por %p445_p13, %p444_p12 }
  0x20   :  { %p447_p1 = pnand %p446_p0, %p440_p11 }
  0x22   :  { %450 = shalt.err (!%p447_p1)
}
  0x23   :  { %42 = dma.hbm_to_vmem [thread:$0]  %s648_s1, 1024, %s37_s8, [#allocation6], %s526_s28, %s526_s28, %s527_s29  }
  0x24   :  { %517 = dma.done.wait [#allocation3], 384  }
  0x25   :  { %518 = vsyncadd [#allocation3], 4294966912 }
  0x26   :  { %519 = dma.done.wait [#allocation6], 1024  }
  0x27   :  { %520 = vsyncadd [#allocation6], 4294966272  ;;  %v529_v0 = vmov 0.0   ;;  %vm530_vm0 = vmmov 0   ;;  %v396_v1 = vld [vmem:[#allocation5] sm:$0xff]   ;;  %v397_v2 = vld [vmem:[#allocation5 + $0x8] sm:$0xff]  }
  0x28   :  { %343 = vmatprep.subr.bf16.mxu0 %v529_v0  ;;  %60 = vst [vmem:[#allocation8] sm:$0x1] %v529_v0  ;;  %61 = vst [vmem:[#allocation10] sm:$0x1] %v529_v0  ;;  %371 = vmatprep.subr.bf16.mxu1 %v529_v0  ;;  %v398_v3 = vld [vmem:[#allocation5 + $0x10] sm:$0xff]   ;;  %v399_v4 = vld [vmem:[#allocation5 + $0x18] sm:$0xff]  }
  0x29   :  { %359 = vmatprep.mubr.msk.bf16.mxu0 %vm530_vm0, %v529_v0  ;;  %363 = vmatprep.mubr.msk.bf16.mxu1 %vm530_vm0, %v529_v0  ;;  %v400_v5 = vld [vmem:[#allocation5 + $0x20] sm:$0xff]   ;;  %v401_v6 = vld [vmem:[#allocation5 + $0x28] sm:$0xff]   ;;  %v402_v7 = vld [vmem:[#allocation5 + $0x30] sm:$0xff]  }
  0x2a   :  { %344 = vmatpush3.bf16.msra.mxu0 %v396_v1  ;;  %379 = vmatpush3.bf16.msra.mxu1 %v396_v1  ;;  %v403_v8 = vld [vmem:[#allocation5 + $0x38] sm:$0xff]   ;;  %v404_v9 = vld [vmem:[#allocation2] sm:$0xff]   ;;  %v405_v10 = vld [vmem:[#allocation2 + $0x8] sm:$0xff]  }
  0x2b   :  { %345 = vmatprep.subr.bf16.mxu0 %v529_v0  ;;  %372 = vmatprep.subr.bf16.mxu1 %v529_v0  ;;  %v406_v11 = vld [vmem:[#allocation2 + $0x10] sm:$0xff]   ;;  %v311_v12 = vld [vmem:[%s649_s2] ss:$0 sm:$0xff]  ;;  %s531_s2 = smov [#allocation7]  }
  0x2c   :  { %s271_s19 = sshll.u32 %s531_s2, 4  ;;  %s272_s19 = int_to_ptr.vmem [resolvable:$true] %s271_s19 }
  0x2d   :  { %s451_s20 = scalar_lea.vmem %s272_s19, 128  ;;  %p456_p3 = scmp.lt.s32.totalorder %s272_s19, %s272_s19 }
  0x2e   :  { %346 = vmatpush3.bf16.msra.mxu0 %v397_v2  ;;  %380 = vmatpush3.bf16.msra.mxu1 %v397_v2  ;;  %p452_p2 = scmp.ne.s32.totalorder %s272_s19, %s451_s20  ;;  %p457_p4 = scmp.lt.s32.totalorder %s451_s20, %s451_s20 }
  0x2f   :  { %347 = vmatprep.subr.bf16.mxu0 %v529_v0  ;;  %373 = vmatprep.subr.bf16.mxu1 %v529_v0 }
  0x30   :  { %p458_p5 = por %p457_p4, %p456_p3 }
  0x32   :  { %348 = vmatpush3.bf16.msra.mxu0 %v398_v3  ;;  %381 = vmatpush3.bf16.msra.mxu1 %v398_v3  ;;  %p459_p6 = pnand %p458_p5, %p452_p2 }
  0x33   :  { %349 = vmatprep.subr.bf16.mxu0 %v529_v0  ;;  %374 = vmatprep.subr.bf16.mxu1 %v529_v0 }
  0x36   :  { %350 = vmatpush3.bf16.msra.mxu0 %v399_v4  ;;  %382 = vmatpush3.bf16.msra.mxu1 %v399_v4 }
  0x37   :  { %351 = vmatprep.subr.bf16.mxu0 %v529_v0  ;;  %375 = vmatprep.subr.bf16.mxu1 %v529_v0 }
  0x3a   :  { %352 = vmatpush3.bf16.msra.mxu0 %v400_v5  ;;  %383 = vmatpush3.bf16.msra.mxu1 %v400_v5 }
  0x3b   :  { %353 = vmatprep.subr.bf16.mxu0 %v529_v0  ;;  %376 = vmatprep.subr.bf16.mxu1 %v529_v0 }
  0x3e   :  { %354 = vmatpush3.bf16.msra.mxu0 %v401_v6  ;;  %384 = vmatpush3.bf16.msra.mxu1 %v401_v6 }
  0x3f   :  { %355 = vmatprep.subr.bf16.mxu0 %v529_v0  ;;  %377 = vmatprep.subr.bf16.mxu1 %v529_v0 }
  0x42   :  { %356 = vmatpush3.bf16.msra.mxu0 %v402_v7  ;;  %385 = vmatpush3.bf16.msra.mxu1 %v402_v7 }
  0x43   :  { %357 = vmatprep.subr.bf16.mxu0 %v529_v0  ;;  %378 = vmatprep.subr.bf16.mxu1 %v529_v0 }
  0x46   :  { %358 = vmatpush3.bf16.msra.mxu0 %v403_v8  ;;  %386 = vmatpush3.bf16.msra.mxu1 %v403_v8 }
  0x49   :  { %360 = vmatmul.mubr.bf16.vlgmr.msra.gmra.mrb[0].mxu0 %v404_v9  ;;  %364 = vmatmul.mubr.bf16.vlgmr.msra.gmra.mrb[0].mxu1 %v405_v10 }
  0x4a   :  { %367 = vmatprep.mubr.msk.bf16.mxu1 %vm530_vm0, %v529_v0 }
  0x51   :  { %368 = vmatmul.mubr.bf16.gmra.mrb[4].mxu1 %v406_v11 }
 0x11c   :  { %v191_v13 = vpop.f32.mrb[0].mxu0  ;;  %v199_v14 = vpop.f32.mrb[0].mxu1 }
 0x11d   :  { %v192_v15 = vadd.f32 %v311_v12, %v191_v13  ;;  %v200_v16 = vadd.f32 %v311_v12, %v199_v14  ;;  %v361_v17 = vpop.f32.mrb[1].mxu0  ;;  %v365_v18 = vpop.f32.mrb[1].mxu1 }
 0x11e   :  { %v194_v19 = vpop.f32.mrb[2].mxu0  ;;  %v202_v20 = vpop.f32.mrb[2].mxu1 }
 0x11f   :  { %v248_v21 = vmax.f32 %v192_v15, %v200_v16  ;;  %v195_v22 = vadd.f32 %v311_v12, %v194_v19  ;;  %v362_v23 = vpop.f32.mrb[3].mxu0  ;;  %v366_v24 = vpop.f32.mrb[3].mxu1  ;;  %v203_v25 = vadd.f32 %v311_v12, %v202_v20  ;;  %v229_v26 = vmul.f32 %v192_v15, %v192_v15 }
 0x120   :  { %v231_v30 = vmul.f32 %v200_v16, %v200_v16 }
 0x121   :  { %v215_v27 = vadd.f32 %v195_v22, %v192_v15  ;;  %v230_v28 = vmul.f32 %v195_v22, %v195_v22  ;;  %v249_v29 = vmax.f32 %v195_v22, %v203_v25  ;;  %v232_v35 = vmul.f32 %v203_v25, %v203_v25 }
 0x123   :  { %v235_v31 = vadd.f32 %v230_v28, %v229_v26  ;;  %v216_v32 = vadd.f32 %v215_v27, %v200_v16 }
 0x124   :  { %v207_v33 = vpop.f32.mrb[4].mxu1 }
 0x125   :  { %v217_v34 = vadd.f32 %v216_v32, %v203_v25  ;;  %v236_v36 = vadd.f32 %v235_v31, %v231_v30  ;;  %v208_v37 = vadd.f32 %v311_v12, %v207_v33  ;;  %v369_v38 = vpop.f32.mrb[5].mxu1 }
 0x126   :  { %v210_v39 = vpop.f32.mrb[6].mxu1 }
 0x127   :  { %v237_v40 = vadd.f32 %v236_v36, %v232_v35  ;;  %v218_v41 = vadd.f32 %v217_v34, %v208_v37  ;;  %v233_v42 = vmul.f32 %v208_v37, %v208_v37  ;;  %v250_v43 = vmax.f32 %v248_v21, %v208_v37  ;;  %v370_v44 = vpop.f32.mrb[7].mxu1 }
 0x128   :  { %v211_v45 = vadd.f32 %v311_v12, %v210_v39 }
 0x129   :  { %v238_v46 = vadd.f32 %v237_v40, %v233_v42 }
 0x12a   :  { %v219_v47 = vadd.f32 %v218_v41, %v211_v45  ;;  %v234_v48 = vmul.f32 %v211_v45, %v211_v45  ;;  %v251_v49 = vmax.f32 %v249_v29, %v211_v45 }
 0x12c   :  { %v220_v50 = vrot.slane %v219_v47, 4  ;;  %v239_v51 = vadd.f32 %v238_v46, %v234_v48  ;;  %v330_v52 = vpack.c.bf16 %v251_v49, %v250_v43 }
 0x12e   :  { %v221_v53 = vadd.f32 %v220_v50, %v219_v47  ;;  %v240_v54 = vrot.slane %v239_v51, 4  ;;  %331 = vst [vmem:[#allocation7] sm:$0xff] %v330_v52  }
 0x12f   :  { %462 = shalt.err (!%p459_p6)
}
 0x130   :  { %s463_s23 = scalar_lea.hbm %s650_s3, 128 }
 0x131   :  { %p464_p7 = scmp.ne.s32.totalorder %s650_s3, %s463_s23  ;;  %p467_p8 = scmp.lt.u32.totalorder %s463_s23, %s650_s3 }
 0x133   :  { %p469_p9 = pnand %p467_p8, %p464_p7 }
 0x135   :  { %472 = shalt.err (!%p469_p9)
}
 0x136   :  { %277 = dma.vmem_to_hbm [thread:$0]  %s272_s19, 128, %s650_s3, [#allocation4], %s526_s28, %s526_s28, %s527_s29   ;;  %v222_v55 = vrot.slane %v221_v53, 2  ;;  %v241_v56 = vadd.f32 %v240_v54, %v239_v51  ;;  %v214_v61 = vld [vmem:[#allocation8] sm:$0x1] }
 0x137   :  { %s532_s7 = smov [#allocation8]   ;;  %v228_v0 = vld [vmem:[#allocation10] sm:$0x1]  ;;  %s533_s9 = smov [#allocation10]  }
 0x138   :  { %v223_v57 = vadd.f32 %v222_v55, %v221_v53  ;;  %v242_v58 = vrot.slane %v241_v56, 2  ;;  %s284_s8 = sshll.u32 %s532_s7, 4  ;;  %s294_s10 = sshll.u32 %s533_s9, 4  ;;  %s285_s8 = int_to_ptr.vmem [resolvable:$true] %s284_s8  ;;  %s615_s10 = int_to_ptr.vmem [resolvable:$true] %s294_s10 }
 0x139   :  { %s473_s3 = scalar_lea.vmem %s285_s8, 16  ;;  %s477_s28 = scalar_lea.vmem %s285_s8, 32 }
 0x13a   :  { %v243_v59 = vadd.f32 %v242_v58, %v241_v56  ;;  %v224_v60 = vrot.slane %v223_v57, 1  ;;  %p474_p10 = scmp.ne.s32.totalorder %s285_s8, %s473_s3  ;;  %p478_p11 = scmp.lt.s32.totalorder %s285_s8, %s285_s8 }
 0x13b   :  { %p479_p12 = scmp.lt.s32.totalorder %s477_s28, %s473_s3 }
 0x13c   :  { %v225_v62 = vadd.f32 %v224_v60, %v223_v57  ;;  %v244_v63 = vrot.slane %v243_v59, 1 }
 0x13d   :  { %p480_p13 = por %p479_p12, %p478_p11 }
 0x13e   :  { %v226_v1 = vadd.f32 %v225_v62, %v214_v61  ;;  %v245_v2 = vadd.f32 %v244_v63, %v243_v59 }
 0x13f   :  { %p481_p0 = pnand %p480_p13, %p474_p10 }
 0x140   :  { %227 = vst [vmem:[#allocation8] sm:$0x1] %v226_v1  ;;  %v246_v3 = vadd.f32 %v245_v2, %v228_v0 }
 0x141   :  { %484 = shalt.err (!%p481_p0)
}
 0x142   :  { %s485_s12 = scalar_lea.hbm %s651_s4, 16 }
 0x143   :  { %p486_p1 = scmp.ne.s32.totalorder %s651_s4, %s485_s12  ;;  %p489_p2 = scmp.lt.u32.totalorder %s485_s12, %s651_s4 }
 0x145   :  { %p491_p3 = pnand %p489_p2, %p486_p1 }
 0x147   :  { %494 = shalt.err (!%p491_p3)
}
 0x148   :  { %287 = dma.vmem_to_hbm [thread:$0]  %s285_s8, 16, %s651_s4, [#allocation9]   ;;  %247 = vst [vmem:[#allocation10] sm:$0x1] %v246_v3 }
 0x149   :  { %s495_s1 = scalar_lea.vmem %s615_s10, 16  ;;  %s499_s18 = scalar_lea.vmem %s615_s10, 32 }
 0x14a   :  { %p496_p4 = scmp.ne.s32.totalorder %s615_s10, %s495_s1  ;;  %p500_p5 = scmp.lt.s32.totalorder %s615_s10, %s615_s10 }
 0x14b   :  { %p501_p6 = scmp.lt.s32.totalorder %s499_s18, %s495_s1 }
 0x14d   :  { %p502_p7 = por %p501_p6, %p500_p5 }
 0x14f   :  { %p503_p8 = pnand %p502_p7, %p496_p4 }
 0x151   :  { %506 = shalt.err (!%p503_p8)
}
 0x152   :  { %s507_s20 = scalar_lea.hbm %s652_s5, 16 }
 0x153   :  { %p508_p9 = scmp.ne.s32.totalorder %s652_s5, %s507_s20  ;;  %p511_p10 = scmp.lt.u32.totalorder %s507_s20, %s652_s5 }
 0x155   :  { %p513_p11 = pnand %p511_p10, %p508_p9 }
 0x157   :  { %516 = shalt.err (!%p513_p11)
}
 0x158   :  { %297 = dma.vmem_to_hbm [thread:$0]  %s615_s10, 16, %s652_s5, [#allocation9]  }
 0x159   :  { %521 = dma.done.wait [#allocation4], 128  }
 0x15a   :  { %522 = vsyncadd [#allocation4], 4294967168 }
 0x15b   :  { %523 = dma.done.wait [#allocation9], 32  }
 0x15c   :  { %524 = vsyncadd [#allocation9], 4294967264 }
 0x15d   :  { %307 = vsyncpa [#allocation3], 1 }
 0x15e   :  { %308 = vsyncpa [#allocation6], 1 }
 0x15f   :  { %309 = vsyncpa [#allocation4], 1 }
 0x160   :  { %310 = vsyncpa [#allocation9], 1 }

</bundles_post_ra>
